<compile_context>
chip_gen: v7x
topology: tpu7x:2x2x1
jax: 0.10.0
libtpu: 0.0.40
codegen_flags: <defaults>
</compile_context>

<pallas_src>
import jax
import jax.numpy as jnp
from jax.experimental import pallas as pl
from jax.experimental.pallas import tpu as pltpu


def _logreg_kernel(x_ref, w_ref, b_ref, o_ref):
    k = pl.program_id(2)

    @pl.when(k == 0)
    def _init():
        o_ref[...] = jnp.zeros_like(o_ref)

    # Accumulate directly into the resident f32 output block (constant (i, j)
    # block index across the K axis).
    o_ref[...] += jnp.dot(
        x_ref[...], w_ref[...], preferred_element_type=jnp.float32
    )

    @pl.when(k == pl.num_programs(2) - 1)
    def _epilogue():
        z = o_ref[...] + b_ref[...]  # (tm, tn) + (1, tn) broadcast
        # sigmoid(z) == 0.5 * tanh(0.5 * z) + 0.5 : exact, one EUP op.
        o_ref[...] = (0.5 * jnp.tanh(0.5 * z) + 0.5).astype(o_ref.dtype)


def _round_up(v, m):
    return ((v + m - 1) // m) * m


def _vmem_budget_bytes():
    """Generation-aware scoped-VMEM budget (leave headroom under physical)."""
    try:
        cap = pltpu.get_tpu_info().vmem_capacity_bytes
    except Exception:
        cap = 64 * 1024 * 1024
    # <= 3/4 of physical, never more than 64 MiB scoped:
    #   v7x (64 MiB physical) -> 48 MiB;  v5e/v6e (128 MiB) -> 64 MiB.
    return min(cap * 3 // 4, 64 * 1024 * 1024)


def _pick_tile(dim, max_tile, align):
    """Return (tile, padded_dim).

    If the dim fits in one tile, use the full dim as the block shape (legal by
    the (8,128)-or-full-dim rule) so no padding / extra HBM pass is needed.
    Otherwise use an `align`-aligned tile and pad the dim up to a multiple.
    """
    if dim <= max_tile:
        return dim, dim
    tile = max((max_tile // align) * align, align)
    return tile, _round_up(dim, tile)


def logistic_regression(x, w, b, *, compute_dtype=None,
                        tm_max=512, tn_max=None, tk_max=None):
    """sigmoid(x @ w + b) via a tiled Pallas TPU kernel.

    x: [B, input_size]
    w: [input_size, output_size]   (transpose of torch Linear.weight)
    b: [output_size] or [1, output_size]
    """
    B, K = x.shape
    Kw, N = w.shape
    assert K == Kw, (K, Kw)

    # bf16 operands (f32 accumulation) for large shapes: MXU fast path on
    # v6e/v7x and half the W-streaming HBM bytes.  Small shapes stay f32.
    if compute_dtype is None:
        compute_dtype = jnp.bfloat16 if min(K, N) >= 512 else jnp.float32
    compute_dtype = jnp.dtype(compute_dtype)
    packing = {4: 8, 2: 16, 1: 32}[compute_dtype.itemsize]

    # Generation-aware VMEM budget and tile caps.
    vmem_budget = _vmem_budget_bytes()
    big_vmem = vmem_budget >= 64 * 1024 * 1024
    if tn_max is None:
        tn_max = 1024 if big_vmem else 512
    if tk_max is None:
        tk_max = 1024 if big_vmem else 512

    tm, Bp = _pick_tile(B, tm_max, packing)   # sublane-packing-aligned batch tile
    tk, Kp = _pick_tile(K, tk_max, 128)       # lane-aligned K tile (or full K)
    tn, Np = _pick_tile(N, tn_max, 128)       # lane-aligned N tile (or full N)

    # Cast once (before any padding), pad only when a dim is actually tiled.
    xp = x.astype(compute_dtype)
    wp = w.astype(compute_dtype)
    bp = jnp.asarray(b, jnp.float32).reshape(1, N)
    if (Bp, Kp) != (B, K):
        xp = jnp.pad(xp, ((0, Bp - B), (0, Kp - K)))
    if (Kp, Np) != (K, N):
        wp = jnp.pad(wp, ((0, Kp - K), (0, Np - N)))
    if Np != N:
        bp = jnp.pad(bp, ((0, 0), (0, Np - N)))

    grid = (Bp // tm, Np // tn, Kp // tk)

    out = pl.pallas_call(
        _logreg_kernel,
        out_shape=jax.ShapeDtypeStruct((Bp, Np), jnp.float32),
        grid_spec=pltpu.PrefetchScalarGridSpec(
            num_scalar_prefetch=0,
            grid=grid,
            in_specs=[
                pl.BlockSpec((tm, tk), lambda i, j, k: (i, k)),
                pl.BlockSpec((tk, tn), lambda i, j, k: (k, j)),
                pl.BlockSpec((1, tn), lambda i, j, k: (0, j)),
            ],
            out_specs=pl.BlockSpec((tm, tn), lambda i, j, k: (i, j)),
        ),
        compiler_params=pltpu.CompilerParams(
            dimension_semantics=("parallel", "parallel", "arbitrary"),
            vmem_limit_bytes=vmem_budget,
        ),
    )(xp, wp, bp)

    if (Bp, Np) != (B, N):
        out = out[:B, :N]
    return out


if __name__ == "__main__":
    # Small shapes consistent with the module: input_size=32, output_size=4.
    batch, input_size, output_size = 8, 32, 4

    key = jax.random.PRNGKey(0)
    kx, kw, kb = jax.random.split(key, 3)

    # Deterministic init mimicking nn.Linear uniform(-1/sqrt(in), 1/sqrt(in)).
    bound = 1.0 / jnp.sqrt(jnp.float32(input_size))
    x = jax.random.normal(kx, (batch, input_size), dtype=jnp.float32)
    w = jax.random.uniform(kw, (input_size, output_size), dtype=jnp.float32,
                           minval=-bound, maxval=bound)
    b = jax.random.uniform(kb, (1, output_size), dtype=jnp.float32,
                           minval=-bound, maxval=bound)

    out = logistic_regression(x, w, b)
    out = jax.block_until_ready(out)

    # Sanity check against plain JAX reference (tanh-form sigmoid is exact).
    ref = jax.nn.sigmoid(x @ w + b)
    assert out.shape == (batch, output_size), out.shape
    max_err = float(jnp.max(jnp.abs(out - ref)))
    assert max_err < 1e-4, max_err

    print("KERNEL_OK")
</pallas_src>

<mosaic_0001>
module attributes {stable_mosaic.version = 11 : i64} {
  func.func @_logreg_kernel(%arg0: i32, %arg1: i32, %arg2: i32, %arg3: memref<8x32xf32, #tpu.memory_space<vmem>>, %arg4: memref<32x4xf32, #tpu.memory_space<vmem>>, %arg5: memref<1x4xf32, #tpu.memory_space<vmem>>, %arg6: memref<8x4xf32, #tpu.memory_space<vmem>>) attributes {dimension_semantics = [#tpu.dimension_semantics<parallel>, #tpu.dimension_semantics<parallel>, #tpu.dimension_semantics<arbitrary>], iteration_bounds = array<i64: 1, 1, 1>, scalar_prefetch = 0 : i64, scratch_operands = 0 : i64, tpu.core_type = #tpu.core_type<tc>, window_params = [{transform_indices = @transform_0, window_bounds = array<i64: 8, 32>}, {transform_indices = @transform_1, window_bounds = array<i64: 32, 4>}, {transform_indices = @transform_2, window_bounds = array<i64: 1, 4>}, {transform_indices = @transform_3, window_bounds = array<i64: 8, 4>}]} {
    %c0_i32 = arith.constant 0 : i32
    %0 = arith.cmpi eq, %arg2, %c0_i32 : i32
    %1 = arith.extui %0 : i1 to i32
    %c0_i32_0 = arith.constant 0 : i32
    %2 = arith.cmpi ne, %1, %c0_i32_0 : i32
    scf.if %2 {
      %cst_10 = arith.constant 0.000000e+00 : f32
      %12 = vector.broadcast %cst_10 : f32 to vector<8x4xf32>
      %c0_11 = arith.constant 0 : index
      %c0_12 = arith.constant 0 : index
      %13 = vector.load %arg6[%c0_11, %c0_12] : memref<8x4xf32, #tpu.memory_space<vmem>>, vector<8x4xf32>
      tpu.vector_store %arg6[%c0_11, %c0_12], %12 {strides = array<i32>} : memref<8x4xf32, #tpu.memory_space<vmem>>, vector<8x4xf32>,
    } else {
    }
    %c0 = arith.constant 0 : index
    %c0_1 = arith.constant 0 : index
    %3 = vector.load %arg6[%c0, %c0_1] : memref<8x4xf32, #tpu.memory_space<vmem>>, vector<8x4xf32>
    %c0_2 = arith.constant 0 : index
    %c0_3 = arith.constant 0 : index
    %4 = vector.load %arg3[%c0_2, %c0_3] : memref<8x32xf32, #tpu.memory_space<vmem>>, vector<8x32xf32>
    %c0_4 = arith.constant 0 : index
    %c0_5 = arith.constant 0 : index
    %5 = vector.load %arg4[%c0_4, %c0_5] : memref<32x4xf32, #tpu.memory_space<vmem>>, vector<32x4xf32>
    %cst = arith.constant dense<0.000000e+00> : vector<8x4xf32>
    %6 = tpu.matmul %4, %5, %cst {dimension_numbers = #tpu.dot_dimension_numbers<[1], [0], [0], [1], [0, 0, 1, 1], [], []>} : vector<8x32xf32>, vector<32x4xf32>, vector<8x4xf32> -> vector<8x4xf32>
    %7 = arith.addf %3, %6 : vector<8x4xf32>
    %c0_6 = arith.constant 0 : index
    %c0_7 = arith.constant 0 : index
    %8 = vector.load %arg6[%c0_6, %c0_7] : memref<8x4xf32, #tpu.memory_space<vmem>>, vector<8x4xf32>
    tpu.vector_store %arg6[%c0_6, %c0_7], %7 {strides = array<i32>} : memref<8x4xf32, #tpu.memory_space<vmem>>, vector<8x4xf32>,
    %c0_i32_8 = arith.constant 0 : i32
    %9 = arith.cmpi eq, %arg2, %c0_i32_8 : i32
    %10 = arith.extui %9 : i1 to i32
    %c0_i32_9 = arith.constant 0 : i32
    %11 = arith.cmpi ne, %10, %c0_i32_9 : i32
    scf.if %11 {
      %c0_10 = arith.constant 0 : index
      %c0_11 = arith.constant 0 : index
      %12 = vector.load %arg6[%c0_10, %c0_11] : memref<8x4xf32, #tpu.memory_space<vmem>>, vector<8x4xf32>
      %c0_12 = arith.constant 0 : index
      %c0_13 = arith.constant 0 : index
      %13 = vector.load %arg5[%c0_12, %c0_13] : memref<1x4xf32, #tpu.memory_space<vmem>>, vector<1x4xf32>
      %14 = vector.broadcast %13 : vector<1x4xf32> to vector<8x4xf32>
      %15 = arith.addf %12, %14 : vector<8x4xf32>
      %cst_14 = arith.constant 5.000000e-01 : f32
      %16 = vector.broadcast %cst_14 : f32 to vector<8x4xf32>
      %17 = arith.mulf %16, %15 : vector<8x4xf32>
      %18 = math.tanh %17 : vector<8x4xf32>
      %cst_15 = arith.constant 5.000000e-01 : f32
      %19 = vector.broadcast %cst_15 : f32 to vector<8x4xf32>
      %20 = arith.mulf %19, %18 : vector<8x4xf32>
      %cst_16 = arith.constant 5.000000e-01 : f32
      %21 = vector.broadcast %cst_16 : f32 to vector<8x4xf32>
      %22 = arith.addf %20, %21 : vector<8x4xf32>
      %c0_17 = arith.constant 0 : index
      %c0_18 = arith.constant 0 : index
      %23 = vector.load %arg6[%c0_17, %c0_18] : memref<8x4xf32, #tpu.memory_space<vmem>>, vector<8x4xf32>
      tpu.vector_store %arg6[%c0_17, %c0_18], %22 {strides = array<i32>} : memref<8x4xf32, #tpu.memory_space<vmem>>, vector<8x4xf32>,
    } else {
    }
    return
  }
  func.func @transform_0(%arg0: i32, %arg1: i32, %arg2: i32) -> (i32, i32) {
    %c0_i32 = arith.constant 0 : i32
    return %arg0, %arg2 : i32, i32
  }
  func.func @transform_1(%arg0: i32, %arg1: i32, %arg2: i32) -> (i32, i32) {
    %c0_i32 = arith.constant 0 : i32
    return %arg2, %arg1 : i32, i32
  }
  func.func @transform_2(%arg0: i32, %arg1: i32, %arg2: i32) -> (i32, i32) {
    %c0_i32 = arith.constant 0 : i32
    %c0_i32_0 = arith.constant 0 : i32
    return %c0_i32, %arg1 : i32, i32
  }
  func.func @transform_3(%arg0: i32, %arg1: i32, %arg2: i32) -> (i32, i32) {
    %c0_i32 = arith.constant 0 : i32
    return %arg0, %arg1 : i32, i32
  }
}

</mosaic_0001>

<bundles_post_ra>
// kernel: tpu_custom_call.1
= control target key start
LH: loop header
LB: loop body
LE: loop exit
PB: predicated region body
PF: predicated region fallthrough
CT: control target
= control target key end

     0   :  { %vm18_vm0 = vcmask 31744   ;;  %v153_v0 = vmov 0.0|0.0   ;;  %v154_v4 = vmov 0.0   ;;  %vm155_vm1 = vmmov 0   ;;  %s212_s1 = inlined_call_operand.vmem [shape: f32[32,4], index: 1, kind: input, shape index: {}]   ;;  %s213_s3 = inlined_call_operand.vmem [shape: f32[8,4], index: 3, kind: output, shape index: {}]   ;;  %s214_s0 = inlined_call_operand.vmem [shape: f32[8,32], index: 0, kind: input, shape index: {}]   ;;  %s215_s2 = inlined_call_operand.vmem [shape: f32[1,4], index: 2, kind: input, shape index: {}]  }
   0x1   :  { %142 = vmatprep.subr.bf16.mxu0 %v153_v0  ;;  %v22_v1 = vld [vmem:[%s212_s1] sm:$0xff]  ;;  %v23_v2 = vld [vmem:[%s212_s1 + $0x8] sm:$0xff]  ;;  %v24_v3 = vld [vmem:[%s212_s1 + $0x10] sm:$0xff]  ;;  %19 = vst.msk [vmem:[%s213_s3] sm:$0xff] %vm18_vm0, %v154_v4  ;;  %139 = vmatprep.mubr.msk.f32.mxu0 %vm155_vm1, %v154_v4  ;;  %vm26_vm2 = vcmask 261120  }
   0x2   :  { %v143_v5 = vpack.c.bf16 %v23_v2, %v22_v1  ;;  %v25_v6 = vld [vmem:[%s212_s1 + $0x18] sm:$0xff]  ;;  %v21_v8 = vld [vmem:[%s214_s0] sm:$0xff] }
   0x3   :  { %v146_v7 = vpack.c.bf16 %v25_v6, %v24_v3  ;;  %v125_v13 = vld [vmem:[%s215_s2] ss:$0 sm:$0xff] }
   0x4   :  { %144 = vmatpush3.bf16.msra.mxu0 %v143_v5 }
   0x5   :  { %145 = vmatprep.subr.bf16.mxu0 %v153_v0 }
   0x8   :  { %147 = vmatpush3.bf16.msra.mxu0 %v146_v7  ;;  %v20_v9 = vld [vmem:[%s213_s3] sm:$0xff] }
   0xb   :  { %140 = vmatmul.mubr.msk.f32.vlgmr.msra.gmra.mrb[0].mxu0 %vm26_vm2, %v21_v8 }
  0xde   :  { %v96_v10 = vpop.f32.mrb[0].mxu0 }
  0xdf   :  { %v100_v11 = vadd.f32 %v96_v10, %v20_v9  ;;  %v141_v12 = vpop.f32.mrb[1].mxu0 }
  0xe1   :  { %102 = vst.msk [vmem:[%s213_s3] sm:$0xff] %vm18_vm0, %v100_v11 }
  0xe8   :  { %v106_v14 = vld [vmem:[%s213_s3] sm:$0xff] }
  0xe9   :  { %v114_v15 = vadd.f32 %v125_v13, %v106_v14 }
  0xeb   :  { %v115_v16 = vmul.f32 0.5, %v114_v15 }
  0xed   :  { %151 = vtanh.f32 %v115_v16 }
  0xf7   :  { %v152_v17 = vpop.eup %151 }
  0xf8   :  { %v117_v18 = vmul.f32 0.5, %v152_v17 }
  0xfa   :  { %v118_v19 = vadd.f32 0.5, %v117_v18 }
  0xfc   :  { %119 = vst.msk [vmem:[%s213_s3] sm:$0xff] %vm18_vm0, %v118_v19 }

</bundles_post_ra>
